<compile_context>
chip_gen: v5e
topology: v5e:2x2
jax: 0.10.0
libtpu: 0.0.40
codegen_flags: <defaults>
</compile_context>

<pallas_src>
import jax
import jax.numpy as jnp
from jax.experimental import pallas as pl
from jax.experimental.pallas import tpu as pltpu


# ------------------------------ Pallas kernel --------------------------------

def _copy_kernel(perm_ref, x_ref, o_ref):
    # perm_ref lives in SMEM (scalar prefetch) and is consumed only by the
    # BlockSpec index_maps; the body is a pure VMEM copy, so the channel gather
    # is done entirely by the pipelined gather DMAs.
    del perm_ref
    o_ref[...] = x_ref[...]


def _permute_channels(z3, perm):
    """z3: (B, C, S) array; perm: (C,) int32. Returns z3[:, perm, :]."""
    B, C, S = z3.shape
    itemsize = z3.dtype.itemsize

    if S % 128 == 0:
        # Lane-dense view (B, C, R, 128); tile the sublane axis R.
        L = 128
        R = S // 128
        if R <= 8:
            tR = R                                        # full extent (legal)
        else:
            # ~1 MiB per block, multiple of 8 sublanes, at most R.
            tR = min(R, max(8, ((1 << 20) // (B * L * itemsize)) // 8 * 8))
    else:
        # Fallback: everything on the lane axis; a full-extent last dim is
        # always a legal block shape even when S is not a multiple of 128.
        L = S
        R = 1
        tR = 1

    z4 = z3.reshape(B, C, R, L)                           # free (contiguous) view
    n_r = pl.cdiv(R, tR)
    nbytes = z3.size * itemsize

    grid_spec = pltpu.PrefetchScalarGridSpec(
        num_scalar_prefetch=1,
        grid=(C, n_r),
        in_specs=[
            # Gather: output channel c is fed from input channel perm[c].
            pl.BlockSpec((B, 1, tR, L),
                         lambda c, r, perm_ref: (0, perm_ref[c], r, 0)),
        ],
        out_specs=pl.BlockSpec((B, 1, tR, L),
                               lambda c, r, perm_ref: (0, c, r, 0)),
    )

    out4 = pl.pallas_call(
        _copy_kernel,
        out_shape=jax.ShapeDtypeStruct((B, C, R, L), z3.dtype),
        grid_spec=grid_spec,
        compiler_params=pltpu.CompilerParams(
            dimension_semantics=("parallel", "parallel")),
        cost_estimate=pl.CostEstimate(
            flops=0, transcendentals=0, bytes_accessed=2 * nbytes),
    )(perm, z4)
    return out4.reshape(B, C, S)


# ------------------------------ Permute "module" ------------------------------

class Permute:
    """JAX/Pallas port of the Permute flow (permutes features along channels)."""

    def __init__(self, num_channels, mode="shuffle", key=None):
        self.mode = mode
        self.num_channels = num_channels
        c = num_channels
        if mode == "shuffle":
            if key is None:
                key = jax.random.PRNGKey(0)
            perm = jax.random.permutation(key, c).astype(jnp.int32)
            inv_perm = jnp.zeros_like(perm).at[perm].set(
                jnp.arange(c, dtype=jnp.int32))
            self.perm, self.inv_perm = perm, inv_perm
        elif mode == "swap":
            # forward: cat([z[:, C//2:], z[:, :C//2]])  -> gather indices:
            self.perm = jnp.concatenate(
                [jnp.arange(c // 2, c), jnp.arange(0, c // 2)]).astype(jnp.int32)
            # inverse: cat([z[:, (C+1)//2:], z[:, :(C+1)//2]]) -> gather indices:
            self.inv_perm = jnp.concatenate(
                [jnp.arange((c + 1) // 2, c),
                 jnp.arange(0, (c + 1) // 2)]).astype(jnp.int32)
        else:
            raise NotImplementedError("The mode " + mode + " is not implemented.")

    def _apply(self, z, perm):
        B, C = z.shape[0], z.shape[1]
        assert C == self.num_channels
        S = 1
        for d in z.shape[2:]:
            S *= d
        z3 = z.reshape(B, C, S)            # flatten spatial (free, contiguous)
        out3 = _permute_channels(z3, perm)
        out = out3.reshape(z.shape)
        log_det = jnp.zeros((), dtype=jnp.float32)   # permutation has |det J| = 1
        return out, log_det

    def forward(self, z, ph0=None, ph1=None):
        return self._apply(z, self.perm)

    def inverse(self, z, ph0=None, ph1=None):
        return self._apply(z, self.inv_perm)


# ----------------------------------- main -------------------------------------

if __name__ == "__main__":
    batch, channels, height, width = 2, 8, 16, 16
    key = jax.random.PRNGKey(0)
    k_perm, k_z = jax.random.split(key)

    z = jax.random.normal(k_z, (batch, channels, height, width), jnp.float32)

    # --- shuffle mode: forward + inverse round-trip ----------------------------
    flow = Permute(channels, mode="shuffle", key=k_perm)
    out, log_det = flow.forward(z)
    out = jax.block_until_ready(out)

    ref = z[:, flow.perm, :, :]
    assert out.shape == z.shape
    assert jnp.array_equal(out, ref)
    assert float(log_det) == 0.0

    z_back, _ = flow.inverse(out)
    z_back = jax.block_until_ready(z_back)
    assert jnp.array_equal(z_back, z)

    # --- swap mode -------------------------------------------------------------
    flow_swap = Permute(channels, mode="swap")
    out_s, _ = flow_swap.forward(z)
    out_s = jax.block_until_ready(out_s)
    ref_s = jnp.concatenate([z[:, channels // 2:], z[:, :channels // 2]], axis=1)
    assert jnp.array_equal(out_s, ref_s)

    z_back_s, _ = flow_swap.inverse(out_s)
    assert jnp.array_equal(jax.block_until_ready(z_back_s), z)

    print("KERNEL_OK")
</pallas_src>

<mosaic_0001>
module attributes {stable_mosaic.version = 11 : i64} {
  func.func @_copy_kernel(%arg0: i32, %arg1: i32, %arg2: memref<8xi32, #tpu.memory_space<smem>>, %arg3: memref<2x1x2x128xf32, #tpu.memory_space<vmem>>, %arg4: memref<2x1x2x128xf32, #tpu.memory_space<vmem>>) attributes {dimension_semantics = [#tpu.dimension_semantics<parallel>, #tpu.dimension_semantics<parallel>], iteration_bounds = array<i64: 8, 1>, scalar_prefetch = 1 : i64, scratch_operands = 0 : i64, tpu.core_type = #tpu.core_type<tc>, window_params = [{transform_indices = @transform_0, window_bounds = array<i64: 2, 1, 2, 128>}, {transform_indices = @transform_1, window_bounds = array<i64: 2, 1, 2, 128>}]} {
    %c0 = arith.constant 0 : index
    %c0_0 = arith.constant 0 : index
    %c0_1 = arith.constant 0 : index
    %c0_2 = arith.constant 0 : index
    %0 = vector.load %arg3[%c0, %c0_0, %c0_1, %c0_2] : memref<2x1x2x128xf32, #tpu.memory_space<vmem>>, vector<2x1x2x128xf32>
    %c0_3 = arith.constant 0 : index
    %c0_4 = arith.constant 0 : index
    %c0_5 = arith.constant 0 : index
    %c0_6 = arith.constant 0 : index
    %1 = vector.load %arg4[%c0_3, %c0_4, %c0_5, %c0_6] : memref<2x1x2x128xf32, #tpu.memory_space<vmem>>, vector<2x1x2x128xf32>
    tpu.vector_store %arg4[%c0_3, %c0_4, %c0_5, %c0_6], %0 {strides = array<i32>} : memref<2x1x2x128xf32, #tpu.memory_space<vmem>>, vector<2x1x2x128xf32>,
    return
  }
  func.func @transform_0(%arg0: i32, %arg1: i32, %arg2: memref<8xi32, #tpu.memory_space<smem>>) -> (i32, i32, i32, i32) {
    %0 = arith.index_cast %arg0 : i32 to index
    %1 = memref.load %arg2[%0] : memref<8xi32, #tpu.memory_space<smem>>
    %c0_i32 = arith.constant 0 : i32
    %c0_i32_0 = arith.constant 0 : i32
    %c0_i32_1 = arith.constant 0 : i32
    return %c0_i32, %1, %arg1, %c0_i32_0 : i32, i32, i32, i32
  }
  func.func @transform_1(%arg0: i32, %arg1: i32, %arg2: memref<8xi32, #tpu.memory_space<smem>>) -> (i32, i32, i32, i32) {
    %c0_i32 = arith.constant 0 : i32
    %c0_i32_0 = arith.constant 0 : i32
    %c0_i32_1 = arith.constant 0 : i32
    return %c0_i32, %arg0, %arg1, %c0_i32_0 : i32, i32, i32, i32
  }
}

</mosaic_0001>

<bundles_post_ra>
// kernel: tpu_custom_call.1
= control target key start
LH: loop header
LB: loop body
LE: loop exit
PB: predicated region body
PF: predicated region fallthrough
CT: control target
= control target key end

     0   :  { %s531_s12 = smov [#allocation3]   ;;  %s728_s0 = inlined_call_operand.hbm [shape: s32[8], index: 0, kind: input, shape index: {}]   ;;  %s729_s1 = inlined_call_operand.hbm [shape: f32[2,8,2,128], index: 1, kind: input, shape index: {}]   ;;  %s730_s2 = inlined_call_operand.hbm [shape: f32[2,8,2,128], index: 2, kind: output, shape index: {}]  }
   0x1   :  { %s8_s11 = sshll.u32 %s728_s0, 4  ;;  %s9_s11 = int_to_ptr.hbm [resolvable:$true] %s8_s11 }
   0x2   :  { %11 = dma.hbm_to_smem %s9_s11, 16, %s531_s12, [#allocation2] }
   0x3   :  { %485 = dma.done.wait [#allocation2], 16 }
   0x4   :  { %486 = vsyncadd [#allocation2], 4294967280 }
   0x5   :  { %14 = sfence }
   0x6   :  { %15 = vsyncpa [#allocation5], 0 }
   0x7   :  { %17 = vsyncpa [#allocation5 + $0x1], 0 }
   0x8   :  { %18 = vsyncpa [#allocation6], 0 }
   0x9   :  { %20 = vsyncpa [#allocation6 + $0x1], 0  ;;  %s556_s13 = smov 0   ;;  %s558_s14 = smov 0  }
   0xa   :  { %s560_s15 = smov 0   ;;  %s562_s16 = smov 0  }
   0xb   :  { %s564_s17 = smov 0   ;;  %s566_s0 = smov 0  }
   0xc   :  { %s568_s18 = smov 0   ;;  %s570_s19 = smov 0  }
   0xd   :  { %s572_s20 = smov 0  }
   0xe LB: > { %733 = sst [smem:[#allocation13_spill]] %s525_s19  ;;  %s269_s21 = sadd.s32 4294967295, %s529_s20   ;;  %s529_s20 = sphi %s572_s20, %s26_s20   ;;  %s525_s19 = sphi %s570_s19, %s742_s19   ;;  %s521_s18 = sphi %s568_s18, %s741_s18   ;;  %s517_s0 = sphi %s566_s0, %s748_s0   ;;  %s513_s17 = sphi %s564_s17, %s747_s17   ;;  %s509_s16 = sphi %s562_s16, %s746_s16   ;;  %s505_s15 = sphi %s560_s15, %s745_s15   ;;  %s501_s14 = sphi %s558_s14, %s744_s14   ;;  %s497_s13 = sphi %s556_s13, %s743_s13  }
   0xf   : > { %s270_s22 = sadd.s32 4294967294, %s529_s20   ;;  %s38_s23 = sadd.s32 1, %s525_s19 }
  0x10   : > { %s42_s24 = sld [smem:[#allocation3 + %s525_s19]]  ;;  %p40_p0 = scmp.ge.s32.totalorder %s38_s23, 8 }
  0x11   : > { %s49_s25 = sadd.s32 1, %s517_s0  ;;  %p56_p1 = scmp.ne.s32.totalorder %s517_s0, %s513_s17 }
  0x12   : > { %p57_p2 = scmp.eq.s32.totalorder %s529_s20, 0  ;;  %s750_s23 = smov (%p40_p0, %s38_s23), 0 }
  0x13   : > { %734 = sst [smem:[#allocation14_spill]] %s750_s23  ;;  %p62_p4 = scmp.ne.s32.totalorder %s513_s17, %s509_s16 }
  0x14   : > { %p609_p3 = por %p57_p2, %p56_p1  ;;  %s43_s27 = sld [smem:[#allocation3 + %s750_s23]] }
  0x15   : > { %p63_p5 = scmp.eq.s32.totalorder %s269_s21, 0  ;;  %s72_s28 = ssub.s32 %s525_s19, %s750_s23 }
  0x16   : > { %s77_s29 = sadd.s32 1, %s505_s15  ;;  %p75_p7 = scmp.eq.s32.totalorder %s72_s28, 0 }
  0x17   : > { %p618_p6 = por %p63_p5, %p62_p4  ;;  %p87_p8 = scmp.ne.s32.totalorder %s505_s15, %s501_s14 }
  0x18   : > { %p88_p9 = scmp.eq.s32.totalorder %s269_s21, 7  ;;  %p93_p11 = scmp.ne.s32.totalorder %s501_s14, %s497_s13 }
  0x19   : > { %s625_s3 = scalar_select %p75_p7, %s505_s15, %s77_s29  }
  0x1a   : > { %p627_p10 = por %p88_p9, %p87_p8  ;;  %s44_s5 = ssub.s32 %s42_s24, %s43_s27 }
  0x1b   : > { %p94_p12 = scmp.eq.s32.totalorder %s270_s22, 7  ;;  %p47_p13 = scmp.eq.s32.totalorder %s44_s5, 0 }
  0x1c   : > { %p298_p1 = scmp.lt.s32.totalorder %s529_s20, 8  ;;  %s114_s8 = sand.u32 1, %s517_s0  }
  0x1d   : > { %p633_p0 = por %p94_p12, %p93_p11  ;;  %s273_s10 = sshll.u32 %s114_s8, 2 }
  0x1e   : > { %s639_s7 = scalar_select %p47_p13, %s517_s0, %s49_s25  }
  0x1f   : > { %p644_p2 = pnand %p298_p1, %p609_p3  ;;  %s118_s21 = scalar_lea.vmem [#allocation4], %s273_s10 }
  0x20   : > { %s282_s11 = scalar_select %p609_p3, [#allocation3], [#allocation8] }
  0x21   : > { %s283_s12 = scalar_select %p609_p3, %s525_s19, 0 }
  0x22   : > { %s752_s11 = smov (!%p298_p1, %s282_s11), [#allocation9]  ;;  %s653_s22 = sshll.u32 %s118_s21, 4  ;;  %s128_s22 = int_to_ptr.vmem [resolvable:$true] %s653_s22 }
  0x23   : > { %s754_s12 = smov (!%p298_p1, %s283_s12), 0  ;;  %p275_p4 = scmp.ge.s32.totalorder %s529_s20, 1 }
  0x24   : > { %s119_s16 = sld [smem:[%s752_s11 + %s754_s12]]  ;;  %p135_p5 = scmp.lt.s32.totalorder %s529_s20, 9 }
  0x25   : > { %s115_s5 = scalar_lea.sflag [#allocation5], %s114_s8  ;;  %p395_p8 = pneg %p644_p2 }
  0x26   : > { %p657_p7 = pnand %p275_p4, %p135_p5  ;;  %s398_s23 = scalar_lea.hbm %s729_s1, 32 }
  0x2a   : > { %s274_s25 = sshll.u32 %s119_s16, 1 }
  0x2b   : > { %s124_s26 = scalar_lea.hbm %s729_s1, %s274_s25 }
  0x2c   : > { %s125_s29 = sshll.u32 %s124_s26, 4  ;;  %s126_s29 = int_to_ptr.hbm [resolvable:$true] %s125_s29 }
  0x2d   : > { %s391_s11 = sshra.s32 %s126_s29, 4  ;;  %s392_s11 = int_to_ptr.hbm [resolvable:$true] %s391_s11 }
  0x2e   : > { %s393_s10 = scalar_lea.hbm %s392_s11, 4  ;;  %p399_p12 = scmp.lt.s32.totalorder %s392_s11, %s729_s1 }
  0x2f   : > { %p394_p3 = scmp.ne.s32.totalorder %s392_s11, %s393_s10  ;;  %p400_p13 = scmp.lt.s32.totalorder %s398_s23, %s393_s10 }
  0x31   : > { %p396_p9 = pnand %p395_p8, %p394_p3  ;;  %p401_p1 = por %p400_p13, %p399_p12 }
  0x33   : > { %p397_p11 = pneg %p396_p9 }
  0x35   : > { %p402_p4 = pnand %p401_p1, %p397_p11 }
  0x37   : > { %405 = shalt.err (!%p402_p4)
}
  0x38   : > { %s532_s8 = smov 256   ;;  %s533_s25 = smov 32  }
  0x39   : > { %s534_s27 = smov 2   ;;  %139 = sbr.rel (%p657_p7) target bundleno = 81 (0x51), region = 24 }
  0x3a   : > { %293 = dma.hbm_to_vmem [thread:$0]  (!%p644_p2), %s126_s29, 64, %s128_s22, %s115_s5, %s532_s8, %s533_s25, %s534_s27  }
  0x3b   : > { %s141_s28 = sand.u32 (!%p657_p7), 1, %s513_s17  }
  0x3c   : > { %s276_s26 = sshll.u32 (!%p657_p7), %s141_s28, 2  ;;  %s142_s12 = scalar_lea.sflag (!%p657_p7), [#allocation5], %s141_s28 }
  0x3d   : > { %s145_s19 = scalar_lea.vmem (!%p657_p7), [#allocation4], %s276_s26 }
  0x3e   : > { %488 = dma.done.wait (%p618_p6), %s142_s12, 64  }
  0x3f   : > { %490 = vsyncadd (%p618_p6), %s142_s12, 4294967232  ;;  %s162_s23 = sand.u32 1, %s501_s14   ;;  %s279_s9 = sshll.u32 %s521_s18, 1  ;;  %v166_v0 = vld [vmem:[%s145_s19] sm:$0xf]  }
  0x40   : > { %s277_s22 = sshll.u32 %s162_s23, 2  ;;  %s182_s5 = scalar_lea.hbm %s730_s2, %s279_s9 }
  0x41   : > { %s164_s11 = scalar_lea.vmem [#allocation7], %s277_s22  ;;  %s185_s21 = sshll.u32 %s182_s5, 4  ;;  %s186_s21 = int_to_ptr.hbm [resolvable:$true] %s185_s21 }
  0x42   : > { %s183_s10 = sshll.u32 %s164_s11, 4  ;;  %168 = vst [vmem:[%s164_s11] sm:$0xf] %v166_v0   ;;  %s171_s16 = scalar_lea.sflag [#allocation6], %s162_s23  ;;  %s184_s10 = int_to_ptr.vmem [resolvable:$true] %s183_s10 }
  0x43   : > { %s435_s30 = sshra.s32 %s186_s21, 4  ;;  %s441_s27 = scalar_lea.hbm %s730_s2, 32  ;;  %s436_s30 = int_to_ptr.hbm [resolvable:$true] %s435_s30 }
  0x44   : > { %s437_s8 = scalar_lea.hbm %s436_s30, 4  ;;  %p442_p7 = scmp.lt.s32.totalorder %s436_s30, %s730_s2 }
  0x45   : > { %p438_p6 = scmp.ne.s32.totalorder %s436_s30, %s437_s8  ;;  %p443_p3 = scmp.lt.s32.totalorder %s441_s27, %s437_s8 }
  0x47   : > { %p439_p2 = pnand %p438_p6, %p627_p10  ;;  %p444_p8 = por %p443_p3, %p442_p7 }
  0x49   : > { %p440_p5 = pneg %p439_p2 }
  0x4b   : > { %p445_p9 = pnand %p444_p8, %p440_p5 }
  0x4d   : > { %448 = shalt.err (!%p445_p9)
}
  0x4e   : > { %s535_s12 = smov 32   ;;  %s536_s19 = smov 256  }
  0x4f   : > { %s537_s23 = smov 2  }
  0x50   : > { %286 = dma.vmem_to_hbm [thread:$0]  (%p627_p10), %s184_s10, 64, %s186_s21, %s171_s16, %s535_s12, %s536_s19, %s537_s23  }
  0x51 PF: > { %p299_p11 = scmp.ge.s32.totalorder %s529_s20, 2  ;;  %s200_s9 = sand.u32 1, %s497_s13  }
  0x52   : > { %s201_s22 = scalar_lea.sflag [#allocation6], %s200_s9 }
  0x53   : > { %p295_p12 = pnand %p299_p11, %p633_p0 }
  0x55   : > { %p296_p13 = pneg %p295_p12 }
  0x57   : > { %492 = dma.done.wait (%p296_p13), %s201_s22, 64  }
  0x58   : > { %494 = vsyncadd (%p296_p13), %s201_s22, 4294967232  ;;  %s26_s20 = sadd.s32 1, %s529_s20   ;;  %s741_s18 = sld [smem:[#allocation13_spill]] }
  0x59   : > { %p23_p1 = scmp.ge.s32.totalorder %s26_s20, 10   ;;  %s742_s19 = sld [smem:[#allocation14_spill]] }
  0x5a   : > { %s743_s13 = smov %s501_s14  ;;  %s744_s14 = smov %s505_s15 }
  0x5b   : > { %s745_s15 = smov %s625_s3  ;;  %s746_s16 = smov %s513_s17 }
  0x5c   : > { %s747_s17 = smov %s517_s0  ;;  %s748_s0 = smov %s639_s7 }
  0x5d   :  { %25 = sbr.rel (!%p23_p1) target bundleno = 14 (0xe), region = 69 }
  0x62   :  { %207 = vsyncpa [#allocation5], 1 }
  0x63   :  { %209 = vsyncpa [#allocation5 + $0x1], 1 }
  0x64   :  { %210 = vsyncpa [#allocation6], 1 }
  0x65   :  { %212 = vsyncpa [#allocation6 + $0x1], 1 }

</bundles_post_ra>
